<compile_context>
chip_gen: v5e
topology: v5e:2x2
jax: 0.10.0
libtpu: 0.0.40
codegen_flags: <defaults>
</compile_context>

<pallas_src>
import jax
import jax.numpy as jnp
from jax.experimental import pallas as pl
from jax.experimental.pallas import tpu as pltpu  # noqa: F401  (TPU backend)

NHEAD = 2
LN_EPS = 1e-5


def _layernorm(x, gamma, beta):
    mu = jnp.mean(x, axis=-1, keepdims=True)
    xc = x - mu
    var = jnp.mean(xc * xc, axis=-1, keepdims=True)
    return xc * jax.lax.rsqrt(var + LN_EPS) * gamma + beta


def epsilon_kernel(h_ref, mask_ref, w_ref, aux_ref, out_ref):
    V, B, D = h_ref.shape
    D2, D3 = 2 * D, 3 * D
    HD = D // NHEAD
    scale = 1.0 / (HD ** 0.5)

    # ---- unpack parameters (static, offset-0 views into the packed blocks) ----
    w_qkv = w_ref[0]                         # (D, 3D) bf16, cols = [q | k | v]
    w_o = w_ref[1][:, 0:D]                   # (D, D)  bf16
    w_ff1 = w_ref[2][:, 0:D]                 # (D, D)  bf16
    w_ff2 = w_ref[3][:, 0:D]                 # (D, D)  bf16
    w_ms = w_ref[4][:, 0:D2]                 # (D, 2D) bf16, cols = [mu | sigma]

    feat = aux_ref[0:V, 0:D]                 # (V, D) f32 embedding table

    def aux_row(i, width):                   # (1, width) f32 bias / LN row
        return aux_ref[V + i:V + i + 1, 0:width]

    b_qkv = aux_row(0, D3)
    b_o = aux_row(1, D)
    g1, b1 = aux_row(2, D), aux_row(3, D)
    b_ff1, b_ff2 = aux_row(4, D), aux_row(5, D)
    g2, b2 = aux_row(6, D), aux_row(7, D)
    b_ms = aux_row(8, D2)

    # ---- x = h + feature_embed * mask_last_tp.permute(2,0,1) ----
    # stacked batch-major: row r = b*V + v  ->  one (B*V, D) matmul M-dim
    h = h_ref[...]                                                # (V, B, D) f32
    mask_vb = jnp.transpose(mask_ref[...].reshape(B, V), (1, 0))  # (V, B) f32
    x = jnp.concatenate(
        [h[:, b, :] + feat * mask_vb[:, b:b + 1] for b in range(B)],
        axis=0)                                                   # (B*V, D) f32

    # ---- fused QKV projection for all tokens (bf16 MXU, f32 accumulate) ----
    qkv = jnp.dot(x.astype(jnp.bfloat16), w_qkv,
                  preferred_element_type=jnp.float32) + b_qkv     # (B*V, 3D) f32

    # ---- 2-head self-attention; head outputs assembled in registers ----
    attn_rows = []
    for b in range(B):
        r0 = b * V
        heads = []
        for hh in range(NHEAD):
            c0 = hh * HD
            q = qkv[r0:r0 + V, c0:c0 + HD]                        # (V, HD)
            k = qkv[r0:r0 + V, D + c0:D + c0 + HD]
            v = qkv[r0:r0 + V, D2 + c0:D2 + c0 + HD]
            s = jax.lax.dot_general(
                q, k, (((1,), (1,)), ((), ())),
                preferred_element_type=jnp.float32) * scale       # (V, V) = q @ k.T
            s = s - jnp.max(s, axis=-1, keepdims=True)
            p = jnp.exp(s)
            p = p * pl.reciprocal(jnp.sum(p, axis=-1, keepdims=True), approx=True)
            heads.append(jnp.dot(p, v, preferred_element_type=jnp.float32))
        attn_rows.append(jnp.concatenate(heads, axis=1))          # (V, D)
    attn = jnp.concatenate(attn_rows, axis=0)                     # (B*V, D)

    # ---- out-projection + post-LN residual 1 (norm_first=False) ----
    attn = jnp.dot(attn.astype(jnp.bfloat16), w_o,
                   preferred_element_type=jnp.float32) + b_o
    x1 = _layernorm(x + attn, g1, b1)

    # ---- feed-forward (dim_feedforward == d_model, ReLU) + post-LN residual 2 ----
    ff = jnp.dot(x1.astype(jnp.bfloat16), w_ff1,
                 preferred_element_type=jnp.float32) + b_ff1
    ff = jnp.maximum(ff, 0.0)
    ff = jnp.dot(ff.astype(jnp.bfloat16), w_ff2,
                 preferred_element_type=jnp.float32) + b_ff2
    x2 = _layernorm(x1 + ff, g2, b2)

    # ---- fused [mu | sigma] projection, lane-dense (V, B*2D) output slab ----
    y = jnp.dot(x2.astype(jnp.bfloat16), w_ms,
                preferred_element_type=jnp.float32) + b_ms        # (B*V, 2D) f32
    # row v, cols [b*2D:(b+1)*2D] = batch b  ->  matches reshape(V, B, 2D) in wrapper
    out_ref[...] = jnp.concatenate(
        [y[b * V:(b + 1) * V, :] for b in range(B)], axis=1)      # (V, B*2D)


def init_params(key, num_variables, d_model):
    """Deterministic synthetic parameters. Linear weights stored pre-transposed
    as (in, out) so the kernel does x @ W + b (== PyTorch x @ W.T + b)."""
    ks = jax.random.split(key, 7)
    V, D = num_variables, d_model

    def lin(k, n_in, n_out):
        bound = 1.0 / (n_in ** 0.5)
        kw, kb = jax.random.split(k)
        w = jax.random.uniform(kw, (n_in, n_out), jnp.float32, -bound, bound)
        b = jax.random.uniform(kb, (n_out,), jnp.float32, -bound, bound)
        return w, b

    wqkv, bqkv = lin(ks[0], D, 3 * D)          # MHA in_proj (fused q|k|v)
    wo, bo = lin(ks[1], D, D)                  # MHA out_proj
    wff1, bff1 = lin(ks[2], D, D)              # ff linear1
    wff2, bff2 = lin(ks[3], D, D)              # ff linear2
    wmu, bmu = lin(ks[4], D, D)                # linear_mu
    wsig, bsig = lin(ks[5], D, D)              # linear_sigma
    feat = jax.random.normal(ks[6], (V, D), jnp.float32)   # nn.Embedding ~ N(0,1)

    return dict(
        feat_embed=feat,
        wqkv=wqkv, bqkv=bqkv, wo=wo, bo=bo,
        g1=jnp.ones((D,), jnp.float32), b1=jnp.zeros((D,), jnp.float32),
        wff1=wff1, bff1=bff1, wff2=wff2, bff2=bff2,
        g2=jnp.ones((D,), jnp.float32), b2=jnp.zeros((D,), jnp.float32),
        wmu=wmu, bmu=bmu, wsig=wsig, bsig=bsig,
    )


def pack_params(params, num_variables, d_model):
    """Pack the 17 parameter tensors into 2 DMA-friendly blocks (done once)."""
    V, D = num_variables, d_model
    D3 = 3 * D

    w = jnp.zeros((5, D, D3), jnp.float32)
    w = w.at[0].set(params["wqkv"])
    w = w.at[1, :, :D].set(params["wo"])
    w = w.at[2, :, :D].set(params["wff1"])
    w = w.at[3, :, :D].set(params["wff2"])
    w = w.at[4, :, :2 * D].set(jnp.concatenate([params["wmu"], params["wsig"]], axis=1))

    aux = jnp.zeros((V + 9, D3), jnp.float32)
    aux = aux.at[0:V, :D].set(params["feat_embed"])
    aux = aux.at[V + 0].set(params["bqkv"])
    aux = aux.at[V + 1, :D].set(params["bo"])
    aux = aux.at[V + 2, :D].set(params["g1"])
    aux = aux.at[V + 3, :D].set(params["b1"])
    aux = aux.at[V + 4, :D].set(params["bff1"])
    aux = aux.at[V + 5, :D].set(params["bff2"])
    aux = aux.at[V + 6, :D].set(params["g2"])
    aux = aux.at[V + 7, :D].set(params["b2"])
    aux = aux.at[V + 8, :2 * D].set(jnp.concatenate([params["bmu"], params["bsig"]]))

    return w.astype(jnp.bfloat16), aux


def epsilon_distribution_forward(h, mask, mask_last_tp, time_encoding, adj,
                                 w_pack, aux_pack):
    """Mirrors epsilon_distribution.forward.
    h: (V, B, D) f32;  mask_last_tp: (B, 1, V) f32.
    mask / time_encoding / adj are unused (as in the PyTorch forward)."""
    del mask, time_encoding, adj
    V, B, D = h.shape
    assert D % NHEAD == 0

    full = lambda shape: pl.BlockSpec(shape, lambda i: (0,) * len(shape))

    out = pl.pallas_call(
        epsilon_kernel,
        grid=(1,),   # single step: whole problem fits VMEM; avoids grid-step overhead
        in_specs=[
            full((V, B, D)),              # h, native layout
            full((B, 1, V)),              # mask_last_tp, native layout
            full(tuple(w_pack.shape)),    # packed weights (bf16)
            full(tuple(aux_pack.shape)),  # packed embed/bias/LN (f32)
        ],
        out_specs=full((V, B * 2 * D)),   # lane-dense (8, 128) slab
        out_shape=jax.ShapeDtypeStruct((V, B * 2 * D), jnp.float32),
    )(h, mask_last_tp, w_pack, aux_pack)

    # split the fused head back into (mu, sigma), both (V, B, D) as in PyTorch
    out = out.reshape(V, B, 2 * D)
    return out[..., :D], out[..., D:]


if __name__ == "__main__":
    V, B, D = 8, 2, 32   # num_variables (seq), batch, d_model (nhead=2 -> head_dim=16)

    root = jax.random.PRNGKey(0)
    k_h, k_m = jax.random.split(root)

    h = jax.random.normal(k_h, (V, B, D), jnp.float32)                        # (V, B, D)
    mask_last_tp = jax.random.bernoulli(k_m, 0.5, (B, 1, V)).astype(jnp.float32)
    mask = jnp.zeros((B, V, V), jnp.float32)            # unused in forward
    time_encoding = jnp.zeros((V, B, D), jnp.float32)   # unused in forward
    adj = jnp.zeros((V, V), jnp.float32)                # unused in forward

    params = init_params(jax.random.PRNGKey(42), V, D)
    w_pack, aux_pack = pack_params(params, V, D)

    mu, sigma = epsilon_distribution_forward(h, mask, mask_last_tp,
                                             time_encoding, adj,
                                             w_pack, aux_pack)
    jax.block_until_ready((mu, sigma))

    assert mu.shape == (V, B, D) and sigma.shape == (V, B, D)
    assert mu.dtype == jnp.float32 and sigma.dtype == jnp.float32
    assert bool(jnp.all(jnp.isfinite(mu))) and bool(jnp.all(jnp.isfinite(sigma)))
    print("KERNEL_OK")
</pallas_src>

<mosaic_0001>
module attributes {stable_mosaic.version = 11 : i64} {
  func.func @epsilon_kernel(%arg0: i32, %arg1: memref<8x2x32xf32, #tpu.memory_space<vmem>>, %arg2: memref<2x1x8xf32, #tpu.memory_space<vmem>>, %arg3: memref<5x32x96xbf16, #tpu.memory_space<vmem>>, %arg4: memref<17x96xf32, #tpu.memory_space<vmem>>, %arg5: memref<8x128xf32, #tpu.memory_space<vmem>>) attributes {dimension_semantics = [#tpu.dimension_semantics<arbitrary>], iteration_bounds = array<i64: 1>, scalar_prefetch = 0 : i64, scratch_operands = 0 : i64, tpu.core_type = #tpu.core_type<tc>, window_params = [{pipeline_mode = #tpu.pipeline_mode<synchronous>, transform_indices = @transform_0, window_bounds = array<i64: 8, 2, 32>}, {pipeline_mode = #tpu.pipeline_mode<synchronous>, transform_indices = @transform_1, window_bounds = array<i64: 2, 1, 8>}, {pipeline_mode = #tpu.pipeline_mode<synchronous>, transform_indices = @transform_2, window_bounds = array<i64: 5, 32, 96>}, {pipeline_mode = #tpu.pipeline_mode<synchronous>, transform_indices = @transform_3, window_bounds = array<i64: 17, 96>}, {pipeline_mode = #tpu.pipeline_mode<synchronous>, transform_indices = @transform_4, window_bounds = array<i64: 8, 128>}]} {
    %c0 = arith.constant 0 : index
    %c0_0 = arith.constant 0 : index
    %c0_1 = arith.constant 0 : index
    %0 = vector.load %arg3[%c0, %c0_0, %c0_1] : memref<5x32x96xbf16, #tpu.memory_space<vmem>>, vector<1x32x96xbf16>
    %1 = vector.shape_cast %0 : vector<1x32x96xbf16> to vector<32x96xbf16>
    %c1 = arith.constant 1 : index
    %c0_2 = arith.constant 0 : index
    %c0_3 = arith.constant 0 : index
    %2 = vector.load %arg3[%c1, %c0_2, %c0_3] : memref<5x32x96xbf16, #tpu.memory_space<vmem>>, vector<1x32x96xbf16>
    %3 = vector.shape_cast %2 : vector<1x32x96xbf16> to vector<32x96xbf16>
    %4 = vector.extract_strided_slice %3 {offsets = [0, 0], sizes = [32, 32], strides = [1, 1]} : vector<32x96xbf16> to vector<32x32xbf16>
    %c2 = arith.constant 2 : index
    %c0_4 = arith.constant 0 : index
    %c0_5 = arith.constant 0 : index
    %5 = vector.load %arg3[%c2, %c0_4, %c0_5] : memref<5x32x96xbf16, #tpu.memory_space<vmem>>, vector<1x32x96xbf16>
    %6 = vector.shape_cast %5 : vector<1x32x96xbf16> to vector<32x96xbf16>
    %7 = vector.extract_strided_slice %6 {offsets = [0, 0], sizes = [32, 32], strides = [1, 1]} : vector<32x96xbf16> to vector<32x32xbf16>
    %c3 = arith.constant 3 : index
    %c0_6 = arith.constant 0 : index
    %c0_7 = arith.constant 0 : index
    %8 = vector.load %arg3[%c3, %c0_6, %c0_7] : memref<5x32x96xbf16, #tpu.memory_space<vmem>>, vector<1x32x96xbf16>
    %9 = vector.shape_cast %8 : vector<1x32x96xbf16> to vector<32x96xbf16>
    %10 = vector.extract_strided_slice %9 {offsets = [0, 0], sizes = [32, 32], strides = [1, 1]} : vector<32x96xbf16> to vector<32x32xbf16>
    %c4 = arith.constant 4 : index
    %c0_8 = arith.constant 0 : index
    %c0_9 = arith.constant 0 : index
    %11 = vector.load %arg3[%c4, %c0_8, %c0_9] : memref<5x32x96xbf16, #tpu.memory_space<vmem>>, vector<1x32x96xbf16>
    %12 = vector.shape_cast %11 : vector<1x32x96xbf16> to vector<32x96xbf16>
    %13 = vector.extract_strided_slice %12 {offsets = [0, 0], sizes = [32, 64], strides = [1, 1]} : vector<32x96xbf16> to vector<32x64xbf16>
    %c0_10 = arith.constant 0 : index
    %c0_11 = arith.constant 0 : index
    %14 = vector.load %arg4[%c0_10, %c0_11] : memref<17x96xf32, #tpu.memory_space<vmem>>, vector<8x32xf32>
    %c8 = arith.constant 8 : index
    %c0_12 = arith.constant 0 : index
    %15 = vector.load %arg4[%c8, %c0_12] : memref<17x96xf32, #tpu.memory_space<vmem>>, vector<1x96xf32>
    %c9 = arith.constant 9 : index
    %c0_13 = arith.constant 0 : index
    %16 = vector.load %arg4[%c9, %c0_13] : memref<17x96xf32, #tpu.memory_space<vmem>>, vector<1x32xf32>
    %c10 = arith.constant 10 : index
    %c0_14 = arith.constant 0 : index
    %17 = vector.load %arg4[%c10, %c0_14] : memref<17x96xf32, #tpu.memory_space<vmem>>, vector<1x32xf32>
    %c11 = arith.constant 11 : index
    %c0_15 = arith.constant 0 : index
    %18 = vector.load %arg4[%c11, %c0_15] : memref<17x96xf32, #tpu.memory_space<vmem>>, vector<1x32xf32>
    %c12 = arith.constant 12 : index
    %c0_16 = arith.constant 0 : index
    %19 = vector.load %arg4[%c12, %c0_16] : memref<17x96xf32, #tpu.memory_space<vmem>>, vector<1x32xf32>
    %c13 = arith.constant 13 : index
    %c0_17 = arith.constant 0 : index
    %20 = vector.load %arg4[%c13, %c0_17] : memref<17x96xf32, #tpu.memory_space<vmem>>, vector<1x32xf32>
    %c14 = arith.constant 14 : index
    %c0_18 = arith.constant 0 : index
    %21 = vector.load %arg4[%c14, %c0_18] : memref<17x96xf32, #tpu.memory_space<vmem>>, vector<1x32xf32>
    %c15 = arith.constant 15 : index
    %c0_19 = arith.constant 0 : index
    %22 = vector.load %arg4[%c15, %c0_19] : memref<17x96xf32, #tpu.memory_space<vmem>>, vector<1x32xf32>
    %c16 = arith.constant 16 : index
    %c0_20 = arith.constant 0 : index
    %23 = vector.load %arg4[%c16, %c0_20] : memref<17x96xf32, #tpu.memory_space<vmem>>, vector<1x64xf32>
    %c0_21 = arith.constant 0 : index
    %c0_22 = arith.constant 0 : index
    %c0_23 = arith.constant 0 : index
    %24 = vector.load %arg1[%c0_21, %c0_22, %c0_23] : memref<8x2x32xf32, #tpu.memory_space<vmem>>, vector<8x2x32xf32>
    %c0_24 = arith.constant 0 : index
    %c0_25 = arith.constant 0 : index
    %c0_26 = arith.constant 0 : index
    %25 = vector.load %arg2[%c0_24, %c0_25, %c0_26] : memref<2x1x8xf32, #tpu.memory_space<vmem>>, vector<2x1x8xf32>
    %26 = vector.shape_cast %25 : vector<2x1x8xf32> to vector<2x8xf32>
    %27 = tpu.transpose %26, [1, 0] : vector<2x8xf32> -> vector<8x2xf32>
    %28 = vector.extract_strided_slice %24 {offsets = [0, 0, 0], sizes = [8, 1, 32], strides = [1, 1, 1]} : vector<8x2x32xf32> to vector<8x1x32xf32>
    %29 = vector.shape_cast %28 : vector<8x1x32xf32> to vector<8x32xf32>
    %30 = vector.extract_strided_slice %27 {offsets = [0, 0], sizes = [8, 1], strides = [1, 1]} : vector<8x2xf32> to vector<8x1xf32>
    %31 = vector.broadcast %30 : vector<8x1xf32> to vector<8x32xf32>
    %32 = arith.mulf %14, %31 : vector<8x32xf32>
    %33 = arith.addf %29, %32 : vector<8x32xf32>
    %34 = vector.extract_strided_slice %24 {offsets = [0, 1, 0], sizes = [8, 1, 32], strides = [1, 1, 1]} : vector<8x2x32xf32> to vector<8x1x32xf32>
    %35 = vector.shape_cast %34 : vector<8x1x32xf32> to vector<8x32xf32>
    %36 = vector.extract_strided_slice %27 {offsets = [0, 1], sizes = [8, 1], strides = [1, 1]} : vector<8x2xf32> to vector<8x1xf32>
    %37 = vector.broadcast %36 : vector<8x1xf32> to vector<8x32xf32>
    %38 = arith.mulf %14, %37 : vector<8x32xf32>
    %39 = arith.addf %35, %38 : vector<8x32xf32>
    %40 = tpu.concatenate %33, %39 in 0 : vector<8x32xf32>, vector<8x32xf32> -> vector<16x32xf32>
    %41 = arith.truncf %40 : vector<16x32xf32> to vector<16x32xbf16>
    %cst = arith.constant dense<0.000000e+00> : vector<16x96xf32>
    %42 = tpu.matmul %41, %1, %cst {dimension_numbers = #tpu.dot_dimension_numbers<[1], [0], [0], [1], [0, 0, 1, 1], [], []>} : vector<16x32xbf16>, vector<32x96xbf16>, vector<16x96xf32> -> vector<16x96xf32>
    %43 = vector.broadcast %15 : vector<1x96xf32> to vector<16x96xf32>
    %44 = arith.addf %42, %43 : vector<16x96xf32>
    %45 = vector.extract_strided_slice %44 {offsets = [0, 0], sizes = [8, 16], strides = [1, 1]} : vector<16x96xf32> to vector<8x16xf32>
    %46 = vector.extract_strided_slice %44 {offsets = [0, 32], sizes = [8, 16], strides = [1, 1]} : vector<16x96xf32> to vector<8x16xf32>
    %47 = vector.extract_strided_slice %44 {offsets = [0, 64], sizes = [8, 16], strides = [1, 1]} : vector<16x96xf32> to vector<8x16xf32>
    %cst_27 = arith.constant dense<0.000000e+00> : vector<8x8xf32>
    %48 = tpu.matmul %45, %46, %cst_27 {dimension_numbers = #tpu.dot_dimension_numbers<[1], [1], [0], [0], [0, 0, 1, 0], [], []>} : vector<8x16xf32>, vector<8x16xf32>, vector<8x8xf32> -> vector<8x8xf32>
    %cst_28 = arith.constant 2.500000e-01 : f32
    %49 = vector.broadcast %cst_28 : f32 to vector<8x8xf32>
    %50 = arith.mulf %48, %49 : vector<8x8xf32>
    %cst_29 = arith.constant dense<0xFF800000> : vector<8xf32>
    %51 = vector.multi_reduction <maximumf>, %50, %cst_29 [1] : vector<8x8xf32> to vector<8xf32>
    %52 = vector.shape_cast %51 : vector<8xf32> to vector<8x1xf32>
    %53 = vector.broadcast %52 : vector<8x1xf32> to vector<8x8xf32>
    %54 = arith.subf %50, %53 : vector<8x8xf32>
    %55 = math.exp %54 : vector<8x8xf32>
    %cst_30 = arith.constant dense<0.000000e+00> : vector<8xf32>
    %56 = vector.multi_reduction <add>, %55, %cst_30 [1] : vector<8x8xf32> to vector<8xf32>
    %57 = vector.shape_cast %56 : vector<8xf32> to vector<8x1xf32>
    %58 = tpu.reciprocal %57 {approx = true} : vector<8x1xf32> -> vector<8x1xf32>
    %59 = vector.broadcast %58 : vector<8x1xf32> to vector<8x8xf32>
    %60 = arith.mulf %55, %59 : vector<8x8xf32>
    %cst_31 = arith.constant dense<0.000000e+00> : vector<8x16xf32>
    %61 = tpu.matmul %60, %47, %cst_31 {dimension_numbers = #tpu.dot_dimension_numbers<[1], [0], [0], [1], [0, 0, 1, 1], [], []>} : vector<8x8xf32>, vector<8x16xf32>, vector<8x16xf32> -> vector<8x16xf32>
    %62 = vector.extract_strided_slice %44 {offsets = [0, 16], sizes = [8, 16], strides = [1, 1]} : vector<16x96xf32> to vector<8x16xf32>
    %63 = vector.extract_strided_slice %44 {offsets = [0, 48], sizes = [8, 16], strides = [1, 1]} : vector<16x96xf32> to vector<8x16xf32>
    %64 = vector.extract_strided_slice %44 {offsets = [0, 80], sizes = [8, 16], strides = [1, 1]} : vector<16x96xf32> to vector<8x16xf32>
    %cst_32 = arith.constant dense<0.000000e+00> : vector<8x8xf32>
    %65 = tpu.matmul %62, %63, %cst_32 {dimension_numbers = #tpu.dot_dimension_numbers<[1], [1], [0], [0], [0, 0, 1, 0], [], []>} : vector<8x16xf32>, vector<8x16xf32>, vector<8x8xf32> -> vector<8x8xf32>
    %cst_33 = arith.constant 2.500000e-01 : f32
    %66 = vector.broadcast %cst_33 : f32 to vector<8x8xf32>
    %67 = arith.mulf %65, %66 : vector<8x8xf32>
    %cst_34 = arith.constant dense<0xFF800000> : vector<8xf32>
    %68 = vector.multi_reduction <maximumf>, %67, %cst_34 [1] : vector<8x8xf32> to vector<8xf32>
    %69 = vector.shape_cast %68 : vector<8xf32> to vector<8x1xf32>
    %70 = vector.broadcast %69 : vector<8x1xf32> to vector<8x8xf32>
    %71 = arith.subf %67, %70 : vector<8x8xf32>
    %72 = math.exp %71 : vector<8x8xf32>
    %cst_35 = arith.constant dense<0.000000e+00> : vector<8xf32>
    %73 = vector.multi_reduction <add>, %72, %cst_35 [1] : vector<8x8xf32> to vector<8xf32>
    %74 = vector.shape_cast %73 : vector<8xf32> to vector<8x1xf32>
    %75 = tpu.reciprocal %74 {approx = true} : vector<8x1xf32> -> vector<8x1xf32>
    %76 = vector.broadcast %75 : vector<8x1xf32> to vector<8x8xf32>
    %77 = arith.mulf %72, %76 : vector<8x8xf32>
    %cst_36 = arith.constant dense<0.000000e+00> : vector<8x16xf32>
    %78 = tpu.matmul %77, %64, %cst_36 {dimension_numbers = #tpu.dot_dimension_numbers<[1], [0], [0], [1], [0, 0, 1, 1], [], []>} : vector<8x8xf32>, vector<8x16xf32>, vector<8x16xf32> -> vector<8x16xf32>
    %79 = tpu.concatenate %61, %78 in 1 : vector<8x16xf32>, vector<8x16xf32> -> vector<8x32xf32>
    %80 = vector.extract_strided_slice %44 {offsets = [8, 0], sizes = [8, 16], strides = [1, 1]} : vector<16x96xf32> to vector<8x16xf32>
    %81 = vector.extract_strided_slice %44 {offsets = [8, 32], sizes = [8, 16], strides = [1, 1]} : vector<16x96xf32> to vector<8x16xf32>
    %82 = vector.extract_strided_slice %44 {offsets = [8, 64], sizes = [8, 16], strides = [1, 1]} : vector<16x96xf32> to vector<8x16xf32>
    %cst_37 = arith.constant dense<0.000000e+00> : vector<8x8xf32>
    %83 = tpu.matmul %80, %81, %cst_37 {dimension_numbers = #tpu.dot_dimension_numbers<[1], [1], [0], [0], [0, 0, 1, 0], [], []>} : vector<8x16xf32>, vector<8x16xf32>, vector<8x8xf32> -> vector<8x8xf32>
    %cst_38 = arith.constant 2.500000e-01 : f32
    %84 = vector.broadcast %cst_38 : f32 to vector<8x8xf32>
    %85 = arith.mulf %83, %84 : vector<8x8xf32>
    %cst_39 = arith.constant dense<0xFF800000> : vector<8xf32>
    %86 = vector.multi_reduction <maximumf>, %85, %cst_39 [1] : vector<8x8xf32> to vector<8xf32>
    %87 = vector.shape_cast %86 : vector<8xf32> to vector<8x1xf32>
    %88 = vector.broadcast %87 : vector<8x1xf32> to vector<8x8xf32>
    %89 = arith.subf %85, %88 : vector<8x8xf32>
    %90 = math.exp %89 : vector<8x8xf32>
    %cst_40 = arith.constant dense<0.000000e+00> : vector<8xf32>
    %91 = vector.multi_reduction <add>, %90, %cst_40 [1] : vector<8x8xf32> to vector<8xf32>
    %92 = vector.shape_cast %91 : vector<8xf32> to vector<8x1xf32>
    %93 = tpu.reciprocal %92 {approx = true} : vector<8x1xf32> -> vector<8x1xf32>
    %94 = vector.broadcast %93 : vector<8x1xf32> to vector<8x8xf32>
    %95 = arith.mulf %90, %94 : vector<8x8xf32>
    %cst_41 = arith.constant dense<0.000000e+00> : vector<8x16xf32>
    %96 = tpu.matmul %95, %82, %cst_41 {dimension_numbers = #tpu.dot_dimension_numbers<[1], [0], [0], [1], [0, 0, 1, 1], [], []>} : vector<8x8xf32>, vector<8x16xf32>, vector<8x16xf32> -> vector<8x16xf32>
    %97 = vector.extract_strided_slice %44 {offsets = [8, 16], sizes = [8, 16], strides = [1, 1]} : vector<16x96xf32> to vector<8x16xf32>
    %98 = vector.extract_strided_slice %44 {offsets = [8, 48], sizes = [8, 16], strides = [1, 1]} : vector<16x96xf32> to vector<8x16xf32>
    %99 = vector.extract_strided_slice %44 {offsets = [8, 80], sizes = [8, 16], strides = [1, 1]} : vector<16x96xf32> to vector<8x16xf32>
    %cst_42 = arith.constant dense<0.000000e+00> : vector<8x8xf32>
    %100 = tpu.matmul %97, %98, %cst_42 {dimension_numbers = #tpu.dot_dimension_numbers<[1], [1], [0], [0], [0, 0, 1, 0], [], []>} : vector<8x16xf32>, vector<8x16xf32>, vector<8x8xf32> -> vector<8x8xf32>
    %cst_43 = arith.constant 2.500000e-01 : f32
    %101 = vector.broadcast %cst_43 : f32 to vector<8x8xf32>
    %102 = arith.mulf %100, %101 : vector<8x8xf32>
    %cst_44 = arith.constant dense<0xFF800000> : vector<8xf32>
    %103 = vector.multi_reduction <maximumf>, %102, %cst_44 [1] : vector<8x8xf32> to vector<8xf32>
    %104 = vector.shape_cast %103 : vector<8xf32> to vector<8x1xf32>
    %105 = vector.broadcast %104 : vector<8x1xf32> to vector<8x8xf32>
    %106 = arith.subf %102, %105 : vector<8x8xf32>
    %107 = math.exp %106 : vector<8x8xf32>
    %cst_45 = arith.constant dense<0.000000e+00> : vector<8xf32>
    %108 = vector.multi_reduction <add>, %107, %cst_45 [1] : vector<8x8xf32> to vector<8xf32>
    %109 = vector.shape_cast %108 : vector<8xf32> to vector<8x1xf32>
    %110 = tpu.reciprocal %109 {approx = true} : vector<8x1xf32> -> vector<8x1xf32>
    %111 = vector.broadcast %110 : vector<8x1xf32> to vector<8x8xf32>
    %112 = arith.mulf %107, %111 : vector<8x8xf32>
    %cst_46 = arith.constant dense<0.000000e+00> : vector<8x16xf32>
    %113 = tpu.matmul %112, %99, %cst_46 {dimension_numbers = #tpu.dot_dimension_numbers<[1], [0], [0], [1], [0, 0, 1, 1], [], []>} : vector<8x8xf32>, vector<8x16xf32>, vector<8x16xf32> -> vector<8x16xf32>
    %114 = tpu.concatenate %96, %113 in 1 : vector<8x16xf32>, vector<8x16xf32> -> vector<8x32xf32>
    %115 = tpu.concatenate %79, %114 in 0 : vector<8x32xf32>, vector<8x32xf32> -> vector<16x32xf32>
    %116 = arith.truncf %115 : vector<16x32xf32> to vector<16x32xbf16>
    %cst_47 = arith.constant dense<0.000000e+00> : vector<16x32xf32>
    %117 = tpu.matmul %116, %4, %cst_47 {dimension_numbers = #tpu.dot_dimension_numbers<[1], [0], [0], [1], [0, 0, 1, 1], [], []>} : vector<16x32xbf16>, vector<32x32xbf16>, vector<16x32xf32> -> vector<16x32xf32>
    %118 = vector.broadcast %16 : vector<1x32xf32> to vector<16x32xf32>
    %119 = arith.addf %117, %118 : vector<16x32xf32>
    %120 = arith.addf %40, %119 : vector<16x32xf32>
    %cst_48 = arith.constant dense<0.000000e+00> : vector<16xf32>
    %121 = vector.multi_reduction <add>, %120, %cst_48 [1] : vector<16x32xf32> to vector<16xf32>
    %122 = vector.shape_cast %121 : vector<16xf32> to vector<16x1xf32>
    %cst_49 = arith.constant 3.200000e+01 : f32
    %123 = vector.broadcast %cst_49 : f32 to vector<16x1xf32>
    %124 = arith.divf %122, %123 : vector<16x1xf32>
    %125 = vector.broadcast %124 : vector<16x1xf32> to vector<16x32xf32>
    %126 = arith.subf %120, %125 : vector<16x32xf32>
    %127 = arith.mulf %126, %126 : vector<16x32xf32>
    %cst_50 = arith.constant dense<0.000000e+00> : vector<16xf32>
    %128 = vector.multi_reduction <add>, %127, %cst_50 [1] : vector<16x32xf32> to vector<16xf32>
    %129 = vector.shape_cast %128 : vector<16xf32> to vector<16x1xf32>
    %cst_51 = arith.constant 3.200000e+01 : f32
    %130 = vector.broadcast %cst_51 : f32 to vector<16x1xf32>
    %131 = arith.divf %129, %130 : vector<16x1xf32>
    %cst_52 = arith.constant 9.99999974E-6 : f32
    %132 = vector.broadcast %cst_52 : f32 to vector<16x1xf32>
    %133 = arith.addf %131, %132 : vector<16x1xf32>
    %134 = math.rsqrt %133 : vector<16x1xf32>
    %135 = vector.broadcast %134 : vector<16x1xf32> to vector<16x32xf32>
    %136 = arith.mulf %126, %135 : vector<16x32xf32>
    %137 = vector.broadcast %17 : vector<1x32xf32> to vector<16x32xf32>
    %138 = arith.mulf %136, %137 : vector<16x32xf32>
    %139 = vector.broadcast %18 : vector<1x32xf32> to vector<16x32xf32>
    %140 = arith.addf %138, %139 : vector<16x32xf32>
    %141 = arith.truncf %140 : vector<16x32xf32> to vector<16x32xbf16>
    %cst_53 = arith.constant dense<0.000000e+00> : vector<16x32xf32>
    %142 = tpu.matmul %141, %7, %cst_53 {dimension_numbers = #tpu.dot_dimension_numbers<[1], [0], [0], [1], [0, 0, 1, 1], [], []>} : vector<16x32xbf16>, vector<32x32xbf16>, vector<16x32xf32> -> vector<16x32xf32>
    %143 = vector.broadcast %19 : vector<1x32xf32> to vector<16x32xf32>
    %144 = arith.addf %142, %143 : vector<16x32xf32>
    %cst_54 = arith.constant 0.000000e+00 : f32
    %145 = vector.broadcast %cst_54 : f32 to vector<16x32xf32>
    %146 = arith.maximumf %144, %145 : vector<16x32xf32>
    %147 = arith.truncf %146 : vector<16x32xf32> to vector<16x32xbf16>
    %cst_55 = arith.constant dense<0.000000e+00> : vector<16x32xf32>
    %148 = tpu.matmul %147, %10, %cst_55 {dimension_numbers = #tpu.dot_dimension_numbers<[1], [0], [0], [1], [0, 0, 1, 1], [], []>} : vector<16x32xbf16>, vector<32x32xbf16>, vector<16x32xf32> -> vector<16x32xf32>
    %149 = vector.broadcast %20 : vector<1x32xf32> to vector<16x32xf32>
    %150 = arith.addf %148, %149 : vector<16x32xf32>
    %151 = arith.addf %140, %150 : vector<16x32xf32>
    %cst_56 = arith.constant dense<0.000000e+00> : vector<16xf32>
    %152 = vector.multi_reduction <add>, %151, %cst_56 [1] : vector<16x32xf32> to vector<16xf32>
    %153 = vector.shape_cast %152 : vector<16xf32> to vector<16x1xf32>
    %cst_57 = arith.constant 3.200000e+01 : f32
    %154 = vector.broadcast %cst_57 : f32 to vector<16x1xf32>
    %155 = arith.divf %153, %154 : vector<16x1xf32>
    %156 = vector.broadcast %155 : vector<16x1xf32> to vector<16x32xf32>
    %157 = arith.subf %151, %156 : vector<16x32xf32>
    %158 = arith.mulf %157, %157 : vector<16x32xf32>
    %cst_58 = arith.constant dense<0.000000e+00> : vector<16xf32>
    %159 = vector.multi_reduction <add>, %158, %cst_58 [1] : vector<16x32xf32> to vector<16xf32>
    %160 = vector.shape_cast %159 : vector<16xf32> to vector<16x1xf32>
    %cst_59 = arith.constant 3.200000e+01 : f32
    %161 = vector.broadcast %cst_59 : f32 to vector<16x1xf32>
    %162 = arith.divf %160, %161 : vector<16x1xf32>
    %cst_60 = arith.constant 9.99999974E-6 : f32
    %163 = vector.broadcast %cst_60 : f32 to vector<16x1xf32>
    %164 = arith.addf %162, %163 : vector<16x1xf32>
    %165 = math.rsqrt %164 : vector<16x1xf32>
    %166 = vector.broadcast %165 : vector<16x1xf32> to vector<16x32xf32>
    %167 = arith.mulf %157, %166 : vector<16x32xf32>
    %168 = vector.broadcast %21 : vector<1x32xf32> to vector<16x32xf32>
    %169 = arith.mulf %167, %168 : vector<16x32xf32>
    %170 = vector.broadcast %22 : vector<1x32xf32> to vector<16x32xf32>
    %171 = arith.addf %169, %170 : vector<16x32xf32>
    %172 = arith.truncf %171 : vector<16x32xf32> to vector<16x32xbf16>
    %cst_61 = arith.constant dense<0.000000e+00> : vector<16x64xf32>
    %173 = tpu.matmul %172, %13, %cst_61 {dimension_numbers = #tpu.dot_dimension_numbers<[1], [0], [0], [1], [0, 0, 1, 1], [], []>} : vector<16x32xbf16>, vector<32x64xbf16>, vector<16x64xf32> -> vector<16x64xf32>
    %174 = vector.broadcast %23 : vector<1x64xf32> to vector<16x64xf32>
    %175 = arith.addf %173, %174 : vector<16x64xf32>
    %176 = vector.extract_strided_slice %175 {offsets = [0, 0], sizes = [8, 64], strides = [1, 1]} : vector<16x64xf32> to vector<8x64xf32>
    %177 = vector.extract_strided_slice %175 {offsets = [8, 0], sizes = [8, 64], strides = [1, 1]} : vector<16x64xf32> to vector<8x64xf32>
    %178 = tpu.concatenate %176, %177 in 1 : vector<8x64xf32>, vector<8x64xf32> -> vector<8x128xf32>
    %c0_62 = arith.constant 0 : index
    %c0_63 = arith.constant 0 : index
    %179 = vector.load %arg5[%c0_62, %c0_63] : memref<8x128xf32, #tpu.memory_space<vmem>>, vector<8x128xf32>
    tpu.vector_store %arg5[%c0_62, %c0_63], %178 {strides = array<i32>} : memref<8x128xf32, #tpu.memory_space<vmem>>, vector<8x128xf32>,
    return
  }
  func.func @transform_0(%arg0: i32) -> (i32, i32, i32) {
    %c0_i32 = arith.constant 0 : i32
    %c0_i32_0 = arith.constant 0 : i32
    %c0_i32_1 = arith.constant 0 : i32
    %c0_i32_2 = arith.constant 0 : i32
    return %c0_i32, %c0_i32_0, %c0_i32_1 : i32, i32, i32
  }
  func.func @transform_1(%arg0: i32) -> (i32, i32, i32) {
    %c0_i32 = arith.constant 0 : i32
    %c0_i32_0 = arith.constant 0 : i32
    %c0_i32_1 = arith.constant 0 : i32
    %c0_i32_2 = arith.constant 0 : i32
    return %c0_i32, %c0_i32_0, %c0_i32_1 : i32, i32, i32
  }
  func.func @transform_2(%arg0: i32) -> (i32, i32, i32) {
    %c0_i32 = arith.constant 0 : i32
    %c0_i32_0 = arith.constant 0 : i32
    %c0_i32_1 = arith.constant 0 : i32
    %c0_i32_2 = arith.constant 0 : i32
    return %c0_i32, %c0_i32_0, %c0_i32_1 : i32, i32, i32
  }
  func.func @transform_3(%arg0: i32) -> (i32, i32) {
    %c0_i32 = arith.constant 0 : i32
    %c0_i32_0 = arith.constant 0 : i32
    %c0_i32_1 = arith.constant 0 : i32
    return %c0_i32, %c0_i32_0 : i32, i32
  }
  func.func @transform_4(%arg0: i32) -> (i32, i32) {
    %c0_i32 = arith.constant 0 : i32
    %c0_i32_0 = arith.constant 0 : i32
    %c0_i32_1 = arith.constant 0 : i32
    return %c0_i32, %c0_i32_0 : i32, i32
  }
}

</mosaic_0001>

<bundles_post_ra>
// kernel: tpu_custom_call.1
= control target key start
LH: loop header
LB: loop body
LE: loop exit
PB: predicated region body
PF: predicated region fallthrough
CT: control target
= control target key end

     0   :  { %9 = vsyncpa [#allocation3], 0  ;;  %s1248_s0 = inlined_call_operand.hbm [shape: f32[8,2,32], index: 0, kind: input, shape index: {}]   ;;  %s1249_s1 = inlined_call_operand.hbm [shape: f32[2,1,8], index: 1, kind: input, shape index: {}]   ;;  %s1250_s2 = inlined_call_operand.hbm [shape: bf16[5,32,96], index: 2, kind: input, shape index: {}]   ;;  %s1251_s3 = inlined_call_operand.hbm [shape: f32[17,96], index: 3, kind: input, shape index: {}]   ;;  %s1252_s4 = inlined_call_operand.hbm [shape: f32[8,128], index: 4, kind: output, shape index: {}]  }
   0x1   :  { %10 = vsyncpa [#allocation6], 0 }
   0x2   :  { %11 = vsyncpa [#allocation9], 0  ;;  %s30_s17 = sshll.u32 %s1249_s1, 4  ;;  %s31_s17 = int_to_ptr.hbm [resolvable:$true] %s30_s17 }
   0x3   :  { %12 = vsyncpa [#allocation4], 0  ;;  %s1105_s18 = smov [#allocation5]   ;;  %s17_s22 = sshll.u32 %s1248_s0, 4  ;;  %s18_s22 = int_to_ptr.hbm [resolvable:$true] %s17_s22 }
   0x4   :  { %s32_s19 = sshll.u32 %s1105_s18, 4  ;;  %s1106_s23 = smov 16   ;;  %s33_s19 = int_to_ptr.vmem [resolvable:$true] %s32_s19 }
   0x5   :  { %s1107_s24 = smov 1   ;;  %s1108_s25 = smov [#allocation2]  }
   0x6   :  { %38 = dma.hbm_to_vmem [thread:$0]  %s31_s17, 32, %s33_s19, [#allocation6], %s1106_s23, %s1106_s23, %s1107_s24  }
   0x7   :  { %s19_s26 = sshll.u32 %s1108_s25, 4  ;;  %s1109_s27 = smov 32   ;;  %s20_s26 = int_to_ptr.vmem [resolvable:$true] %s19_s26 }
   0x8   :  { %s1110_s1 = smov 2   ;;  %s43_s30 = sshll.u32 %s1250_s2, 4  ;;  %s44_s30 = int_to_ptr.hbm [resolvable:$true] %s43_s30 }
   0x9   :  { %25 = dma.hbm_to_vmem [thread:$0]  %s18_s22, 256, %s20_s26, [#allocation3], %s1109_s27, %s1109_s27, %s1110_s1  }
   0xa   :  { %s1111_s5 = smov [#allocation7]   ;;  %s56_s8 = sshll.u32 %s1251_s3, 4  ;;  %s57_s8 = int_to_ptr.hbm [resolvable:$true] %s56_s8 }
   0xb   :  { %s45_s6 = sshll.u32 %s1111_s5, 4  ;;  %s1112_s9 = smov 64   ;;  %s46_s6 = int_to_ptr.vmem [resolvable:$true] %s45_s6 }
   0xc   :  { %s1113_s10 = smov 4   ;;  %s1114_s11 = smov [#allocation8]  }
   0xd   :  { %51 = dma.hbm_to_vmem [thread:$0]  %s44_s30, 1280, %s46_s6, [#allocation6], %s1112_s9, %s1112_s9, %s1113_s10  }
   0xe   :  { %s58_s12 = sshll.u32 %s1114_s11, 4  ;;  %s1115_s13 = smov 128   ;;  %s59_s12 = int_to_ptr.vmem [resolvable:$true] %s58_s12 }
   0xf   :  { %s1116_s14 = smov 8  }
  0x10   :  { %64 = dma.hbm_to_vmem [thread:$0]  %s57_s8, 384, %s59_s12, [#allocation9], %s1115_s13, %s1115_s13, %s1116_s14  }
  0x11   :  { %1097 = dma.done.wait [#allocation3], 256  }
  0x12   :  { %1098 = vsyncadd [#allocation3], 4294967040 }
  0x13   :  { %1099 = dma.done.wait [#allocation6], 1312  }
  0x14   :  { %1100 = vsyncadd [#allocation6], 4294965984 }
  0x15   :  { %1101 = dma.done.wait [#allocation9], 384  }
  0x16   :  { %1102 = vsyncadd [#allocation9], 4294966912  ;;  %v1117_v0 = vmov 1   ;;  %v124_v1 = vld [vmem:[#allocation5] sm:$0x1]  ;;  %v1118_v4 = vmov 0  }
  0x17   :  { %935 = vset.pattern.permute.xlu1 %v1117_v0  ;;  %v125_v2 = vld [vmem:[#allocation5 + $0x1] sm:$0x1]  ;;  %128 = vst [vmem:[#allocation1] ss:$9 sm:$0xff] %v124_v1  ;;  %v904_v6 = vld [vmem:[#allocation7 + $0x8] sm:$0xff]  ;;  %v903_v7 = vld [vmem:[#allocation7] sm:$0xff] }
  0x18   :  { %130 = vst [vmem:[#allocation1 + $0x1] ss:$9 sm:$0xff] %v125_v2  ;;  %301 = vmatpush.bf16.msra.mxu0 %v904_v6  ;;  %v106_v8 = vld [vmem:[#allocation8] sm:$0xff]  ;;  %v116_v13 = vld [vmem:[#allocation2] sm:$0x3]  ;;  %vm233_vm0 = vcmask 1041409  }
  0x19   :  { %v117_v14 = vld [vmem:[#allocation2 + $0x2] sm:$0x3]  ;;  %v118_v15 = vld [vmem:[#allocation2 + $0x4] sm:$0x3]  ;;  %v119_v18 = vld [vmem:[#allocation2 + $0x6] sm:$0x3] }
  0x1a   :  { %vm236_vm1 = vcmask 1042434   ;;  %vm239_vm2 = vcmask 1043459   ;;  %v120_v21 = vld [vmem:[#allocation2 + $0x8] sm:$0x3]  ;;  %vm242_vm3 = vcmask 1044484   ;;  %vm245_vm4 = vcmask 1045509  }
  0x1b   :  { %v121_v24 = vld [vmem:[#allocation2 + $0xa] sm:$0x3]  ;;  %vm248_vm5 = vcmask 1046534   ;;  %v122_v29 = vld [vmem:[#allocation2 + $0xc] sm:$0x3]  ;;  %vm251_vm6 = vcmask 1047559  }
  0x1c   :  { %302 = vmatpush.bf16.msra.mxu0 %v903_v7  ;;  %v123_v34 = vld [vmem:[#allocation2 + $0xe] sm:$0x3]  ;;  %vm291_vm7 = vcmask 261120   ;;  %s1119_s2 = smov 80   ;;  %s1120_s3 = smov 96   ;;  %vm312_vm8 = vcmask 130048  }
  0x1d   :  { %s1121_s15 = smov 112   ;;  %vm338_vm9 = vcmask 64512   ;;  %s1122_s16 = smov 48  }
  0x1e   :  { %s1124_s17 = smov [#allocation10]   ;;  %s834_s21 = sshll.u32 %s1252_s4, 4  ;;  %s835_s21 = int_to_ptr.hbm [resolvable:$true] %s834_s21 }
  0x1f   :  { %v131_v3 = vld [vmem:[#allocation1] sm:$0xff]  ;;  %s832_s18 = sshll.u32 %s1124_s17, 4  ;;  %s833_s18 = int_to_ptr.vmem [resolvable:$true] %s832_s18 }
  0x20   :  { %133 = vxpose.xlu0.b32.start.end [1/1] (short) (narrow) %v131_v3, 8 }
  0x87   :  { %934 = vset.pattern.permute.xlu0 %v1118_v4 }
  0xc4   :  { %v149_v5 = vpop.trf.xlu0 }
  0xc5   :  { %196 = vperm.xlu1 %935, %v149_v5   ;;  %167 = vperm.xlu0 %934, %v149_v5  }
  0xcd   :  { %941 = vset.pattern.permute.xlu0 %v1117_v0 }
 0x137   :  { %v197_v9 = vpop.permute.xlu1 %196  ;;  %v168_v10 = vpop.permute.xlu0 %167 }
 0x138   :  { %v170_v11 = vmul.f32 %v168_v10, %v106_v8  ;;  %v199_v12 = vmul.f32 %v197_v9, %v106_v8 }
 0x13a   :  { %v172_v16 = vrot.slane %v170_v11, 1  ;;  %v173_v17 = vrot.slane %v170_v11, 2  ;;  %v174_v19 = vrot.slane %v170_v11, 3  ;;  %v175_v20 = vrot.slane %v170_v11, 4 }
 0x13b   :  { %v176_v22 = vrot.slane %v170_v11, 5  ;;  %v177_v23 = vrot.slane %v170_v11, 6  ;;  %v178_v25 = vrot.slane %v170_v11, 7  ;;  %v201_v28 = vrot.slane %v199_v12, 7 }
 0x13c   :  { %v188_v26 = vadd.f32 %v172_v16, %v117_v14  ;;  %v189_v27 = vadd.f32 %v173_v17, %v118_v15  ;;  %v202_v30 = vrot.slane %v199_v12, 1  ;;  %v203_v31 = vrot.slane %v199_v12, 2  ;;  %v942_v16 = vld [vmem:[#allocation8 + $0x8] ss:$0 sm:$0xff] }
 0x13d   :  { %v204_v32 = vrot.slane %v199_v12, 3  ;;  %v205_v33 = vrot.slane %v199_v12, 4  ;;  %v187_v35 = vadd.f32 %v170_v11, %v116_v13  ;;  %v190_v36 = vadd.f32 %v174_v19, %v119_v18 }
 0x13e   :  { %v191_v37 = vadd.f32 %v175_v20, %v120_v21  ;;  %v216_v38 = vadd.f32 %v201_v28, %v116_v13  ;;  %v192_v39 = vadd.f32 %v176_v22, %v121_v24  ;;  %v206_v40 = vrot.slane %v199_v12, 5 }
 0x13f   :  { %v207_v41 = vrot.slane %v199_v12, 6  ;;  %v218_v42 = vadd.f32 %v202_v30, %v118_v15  ;;  %v193_v43 = vadd.f32 %v177_v23, %v122_v29  ;;  %v219_v44 = vadd.f32 %v203_v31, %v119_v18 }
 0x140   :  { %v232_v45 = vrot.slane %v188_v26, 7  ;;  %v235_v46 = vrot.slane %v189_v27, 6  ;;  %v194_v47 = vadd.f32 %v178_v25, %v123_v34  ;;  %v217_v48 = vadd.f32 %v199_v12, %v117_v14 }
 0x141   :  { %v220_v49 = vadd.f32 %v204_v32, %v120_v21  ;;  %v221_v50 = vadd.f32 %v205_v33, %v121_v24  ;;  %v238_v52 = vrot.slane %v190_v36, 5  ;;  %v262_v53 = vrot.slane %v216_v38, 1 }
 0x142   :  { %v234_v51 = vsel %vm233_vm0, %v232_v45, %v187_v35  ;;  %v264_v54 = vrot.slane %v218_v42, 7  ;;  %v222_v55 = vadd.f32 %v206_v40, %v122_v29  ;;  %v223_v56 = vadd.f32 %v207_v41, %v123_v34 }
 0x143   :  { %v237_v57 = vsel %vm236_vm1, %v235_v46, %v234_v51  ;;  %v241_v58 = vrot.slane %v191_v37, 4  ;;  %v244_v60 = vrot.slane %v192_v39, 3  ;;  %v263_v61 = vsel %vm233_vm0, %v217_v48, %v262_v53 }
 0x144   :  { %v240_v59 = vsel %vm239_vm2, %v238_v52, %v237_v57  ;;  %v266_v62 = vrot.slane %v219_v44, 6  ;;  %v247_v0 = vrot.slane %v193_v43, 2  ;;  %v265_v1 = vsel %vm236_vm1, %v264_v54, %v263_v61 }
 0x145   :  { %v243_v63 = vsel %vm242_vm3, %v241_v58, %v240_v59  ;;  %v268_v2 = vrot.slane %v220_v49, 5  ;;  %v250_v4 = vrot.slane %v194_v47, 1  ;;  %v270_v6 = vrot.slane %v221_v50, 4 }
 0x146   :  { %v246_v3 = vsel %vm245_vm4, %v244_v60, %v243_v63  ;;  %v267_v5 = vsel %vm239_vm2, %v266_v62, %v265_v1  ;;  %v272_v9 = vrot.slane %v222_v55, 3  ;;  %v274_v12 = vrot.slane %v223_v56, 2 }
 0x147   :  { %v249_v7 = vsel %vm248_vm5, %v247_v0, %v246_v3  ;;  %v269_v8 = vsel %vm242_vm3, %v268_v2, %v267_v5 }
 0x148   :  { %v1177_v10 = vsel %vm251_vm6, %v250_v4, %v249_v7  ;;  %v271_v11 = vsel %vm245_vm4, %v270_v6, %v269_v8 }
 0x149   :  { %v273_v13 = vsel %vm248_vm5, %v272_v9, %v271_v11 }
 0x14a   :  { %v1182_v14 = vsel %vm251_vm6, %v274_v12, %v273_v13 }
 0x14b   :  { %v277_v15 = vpack.c.bf16 %v1182_v14, %v1177_v10 }
 0x14d   :  { %854 = vmatmul.msk.bf16.vlgmr.msra.gmra.mxu0 %vm291_vm7, %v277_v15  ;;  %v906_v15 = vld [vmem:[#allocation7 + $0x18] sm:$0xff] }
 0x1ca   :  { %v304_v17 = vpop.f32.mrf.mxu0 }
 0x1cb   :  { %v305_v18 = vadd.f32 %v942_v16, %v304_v17 }
 0x1cd   :  { %378 = vrot.lane.b32.xlu2 %v305_v18, %s1119_s2  ;;  %310 = vrot.lane.b32.xlu1 %v305_v18, %s1120_s3 }
 0x1d2   :  { %v306_v39 = vpop.f32.mrf.mxu0 }
 0x1d3   :  { %v307_v40 = vadd.f32 %v942_v16, %v306_v39 }
 0x1d5   :  { %376 = vrot.lane.b32.xlu2 %v305_v18, %s1121_s15 }
 0x227   :  { %v379_v19 = vpop.permute.xlu2 %378 }
 0x228   :  { %858 = vmatpush.xpose.msk.msra.mxu3 %vm312_vm8, %v379_v19 }
 0x22f   :  { %v377_v20 = vpop.permute.xlu2 %376 }
 0x230   :  { %859 = vmatmul.msk.f32.vlgmr.msra.gmra.mxu3 %vm312_vm8, %v377_v20 }
 0x23f   :  { %v311_v21 = vpop.permute.xlu1 %310 }
 0x240   :  { %855 = vmatpush.xpose.msk.msra.mxu1 %vm312_vm8, %v311_v21 }
 0x243   :  { %856 = vmatmul.msk.f32.vlgmr.msra.gmra.mxu1 %vm312_vm8, %v305_v18 }
 0x2b3   :  { %v401_v22 = vpop.f32.mrf.mxu3 }
 0x2b4   :  { %v404_v23 = vmul.f32 0.25, %v401_v22 }
 0x2b6   :  { %v405_v24 = vsel %vm338_vm9, %v404_v23, -inf }
 0x2b7   :  { %406 = vmax.xlane.f32.xlu2 %v405_v24 }
 0x2c0   :  { %v334_v25 = vpop.f32.mrf.mxu1 }
 0x2c1   :  { %v337_v26 = vmul.f32 0.25, %v334_v25 }
 0x2c3   :  { %v339_v27 = vsel %vm338_vm9, %v337_v26, -inf }
 0x2c4   :  { %340 = vmax.xlane.f32.xlu1 %v339_v27 }
 0x2cf   :  { %350 = vrot.lane.b32.xlu2 %v305_v18, %s1112_s9 }
 0x2dd   :  { %416 = vrot.lane.b32.xlu1 %v305_v18, %s1122_s16  ;;  %v905_v18 = vld [vmem:[#allocation7 + $0x10] sm:$0xff] }
 0x32a   :  { %v407_v28 = vpop.xlane.xlu2 %406 }
 0x32b   :  { %v408_v29 = vsub.f32 %v404_v23, %v407_v28 }
 0x32d   :  { %v409_v30 = vmul.f32 1.442695, %v408_v29 }
 0x32f   :  { %951 = vpow2.f32 %v409_v30 }
 0x332   :  { %v351_v31 = vpop.permute.xlu2 %350 }
 0x333   :  { %371 = vmatpush.msra.mxu2 %v351_v31 }
 0x335   :  { %v952_v32 = vpop.eup %951 }
 0x336   :  { %v411_v33 = vsel %vm338_vm9, %v952_v32, 0.0 }
 0x337   :  { %412 = vadd.xlane.f32.xlu1 %v411_v33  ;;  %v341_v34 = vpop.xlane.xlu1 %340 }
 0x338   :  { %v342_v35 = vsub.f32 %v337_v26, %v341_v34  ;;  %v943_v26 = vld [vmem:[#allocation8 + $0x9] ss:$0 sm:$0xff] }
 0x33a   :  { %v343_v36 = vmul.f32 1.442695, %v342_v35  ;;  %v1123_v35 = vmov 32.0  }
 0x33c   :  { %953 = vpow2.f32 %v343_v36 }
 0x342   :  { %v954_v37 = vpop.eup %953 }
 0x343   :  { %v345_v38 = vsel %vm338_vm9, %v954_v37, 0.0 }
 0x344   :  { %346 = vadd.xlane.f32.xlu2 %v345_v38 }
 0x34f   :  { %v417_v41 = vpop.permute.xlu1 %416 }
 0x350   :  { %512 = vrot.lane.b32.xlu1 %v307_v40, %s1121_s15  ;;  %437 = vmatpush.msrb.mxu2 %v417_v41 }
 0x35c   :  { %514 = vrot.lane.b32.xlu2 %v307_v40, %s1119_s2 }
 0x364   :  { %448 = vrot.lane.b32.xlu2 %v307_v40, %s1120_s3 }
 0x3aa   :  { %v413_v43 = vpop.xlane.xlu1 %412 }
 0x3b7   :  { %v347_v42 = vpop.xlane.xlu2 %346 }
 0x3b8   :  { %955 = vrcp.f32 %v347_v42 }
 0x3b9   :  { %957 = vrcp.f32 %v413_v43 }
 0x3be   :  { %v956_v44 = vpop.eup %955 }
 0x3bf   :  { %v515_v45 = vpop.permute.xlu2 %514  ;;  %v349_v46 = vmul.f32 %v956_v44, %v954_v37  ;;  %v958_v47 = vpop.eup %957 }
 0x3c0   :  { %v415_v49 = vmul.f32 %v958_v47, %v952_v32 }
 0x3c1   :  { %857 = vmatmul.msk.f32.vlgmr.msra.gmra.mxu2 %vm338_vm9, %v349_v46 }
 0x3c2   :  { %864 = vmatpush.xpose.msk.msra.mxu2 %vm312_vm8, %v515_v45  ;;  %v513_v50 = vpop.permute.xlu1 %512 }
 0x3c7   :  { %v449_v48 = vpop.permute.xlu2 %448 }
 0x3c8   :  { %861 = vmatpush.xpose.msk.msrb.mxu1 %vm312_vm8, %v449_v48 }
 0x3c9   :  { %860 = vmatmul.msk.f32.vlgmr.msrb.gmra.mxu2 %vm338_vm9, %v415_v49 }
 0x3cb   :  { %862 = vmatmul.msk.f32.vlgmr.msrb.gmra.mxu1 %vm312_vm8, %v307_v40 }
 0x3d1   :  { %865 = vmatmul.msk.f32.vlgmr.msra.gmra.mxu2 %vm312_vm8, %v513_v50  ;;  %v908_v50 = vld [vmem:[#allocation7 + $0x28] sm:$0xff] }
 0x3d2   :  { %696 = vmatpush.bf16.msrb.mxu0 %v908_v50 }
 0x444   :  { %v373_v51 = vpop.f32.mrf.mxu2 }
 0x448   :  { %v471_v52 = vpop.f32.mrf.mxu1 }
 0x449   :  { %v474_v53 = vmul.f32 0.25, %v471_v52 }
 0x44b   :  { %v475_v54 = vsel %vm338_vm9, %v474_v53, -inf }
 0x44c   :  { %476 = vmax.xlane.f32.xlu2 %v475_v54  ;;  %v439_v55 = vpop.f32.mrf.mxu2 }
 0x454   :  { %v537_v56 = vpop.f32.mrf.mxu2 }
 0x455   :  { %v540_v57 = vmul.f32 0.25, %v537_v56 }
 0x457   :  { %v541_v58 = vsel %vm338_vm9, %v540_v57, -inf }
 0x458   :  { %542 = vmax.xlane.f32.xlu1 %v541_v58 }
 0x471   :  { %552 = vrot.lane.b32.xlu1 %v307_v40, %s1122_s16 }
 0x4bf   :  { %v477_v59 = vpop.xlane.xlu2 %476 }
 0x4c0   :  { %v478_v60 = vsub.f32 %v474_v53, %v477_v59  ;;  %v907_v53 = vld [vmem:[#allocation7 + $0x20] sm:$0xff] }
 0x4c1   :  { %697 = vmatpush.bf16.msrb.mxu0 %v907_v53 }
 0x4c2   :  { %v479_v61 = vmul.f32 1.442695, %v478_v60 }
 0x4c4   :  { %959 = vpow2.f32 %v479_v61 }
 0x4ca   :  { %v960_v62 = vpop.eup %959 }
 0x4cb   :  { %v543_v63 = vpop.xlane.xlu1 %542  ;;  %v481_v0 = vsel %vm338_vm9, %v960_v62, 0.0 }
 0x4cc   :  { %v544_v1 = vsub.f32 %v540_v57, %v543_v63  ;;  %482 = vadd.xlane.f32.xlu2 %v481_v0 }
 0x4ce   :  { %v545_v2 = vmul.f32 1.442695, %v544_v1 }
 0x4d0   :  { %961 = vpow2.f32 %v545_v2 }
 0x4d6   :  { %v962_v3 = vpop.eup %961 }
 0x4d7   :  { %v547_v4 = vsel %vm338_vm9, %v962_v3, 0.0 }
 0x4d8   :  { %548 = vadd.xlane.f32.xlu0 %v547_v4 }
 0x4e3   :  { %v553_v5 = vpop.permute.xlu1 %552 }
 0x4e4   :  { %486 = vrot.lane.b32.xlu2 %v307_v40, %s1112_s9  ;;  %573 = vmatpush.msra.mxu1 %v553_v5 }
 0x53f   :  { %v483_v6 = vpop.xlane.xlu2 %482 }
 0x540   :  { %963 = vrcp.f32 %v483_v6 }
 0x546   :  { %v964_v7 = vpop.eup %963 }
 0x547   :  { %v487_v8 = vpop.permute.xlu2 %486  ;;  %v485_v9 = vmul.f32 %v964_v7, %v960_v62  ;;  %v944_v7 = vld [vmem:[#allocation8 + $0xa] ss:$0 sm:$0xff] }
 0x548   :  { %507 = vmatpush.msrb.mxu3 %v487_v8 }
 0x549   :  { %863 = vmatmul.msk.f32.vlgmr.msrb.gmra.mxu3 %vm338_vm9, %v485_v9 }
 0x54a   :  { %606 = vmatpush.bf16.msra.mxu3 %v906_v15 }
 0x54b   :  { %v549_v11 = vpop.xlane.xlu0 %548 }
 0x54c   :  { %965 = vrcp.f32 %v549_v11 }
 0x54d   :  { %967 = vrcp.f32 %v1123_v35 }
 0x54e   :  { %607 = vmatpush.bf16.msra.mxu3 %v905_v18 }
 0x552   :  { %v966_v12 = vpop.eup %965 }
 0x553   :  { %v551_v13 = vmul.f32 %v966_v12, %v962_v3  ;;  %v968_v36 = vpop.eup %967 }
 0x554   :  { %v623_v37 = vmul.f32 32.0, %v968_v36  ;;  %vm627_vm10 = vweird.f32 %v968_v36 }
 0x555   :  { %866 = vmatmul.msk.f32.vlgmr.msra.gmra.mxu1 %vm338_vm9, %v551_v13  ;;  %v945_v13 = vld [vmem:[#allocation8 + $0xb] ss:$0 sm:$0xff] }
 0x556   :  { %v624_v38 = vsub.f32 1.0, %v623_v37 }
 0x558   :  { %v625_v39 = vmul.f32 %v968_v36, %v624_v38 }
 0x55a   :  { %v626_v40 = vadd.f32 %v968_v36, %v625_v39 }
 0x55c   :  { %v1225_v41 = vsel %vm627_vm10, %v968_v36, %v626_v40 }
 0x5cc   :  { %v509_v22 = vpop.f32.mrf.mxu3 }
 0x5d2   :  { %v575_v16 = vpop.f32.mrf.mxu1 }
 0x5d3   :  { %v936_v17 = vpack.i.bf16 %v575_v16, %v439_v55 }
 0x5d5   :  { %937 = vrot.lane.b32.xlu0 %v936_v17, %s1106_s23 }
 0x647   :  { %v938_v19 = vpop.permute.xlu0 %937 }
 0x648   :  { %v940_v20 = vunpack.i.h.bf16 %v938_v19  ;;  %v939_v21 = vunpack.i.l.bf16 %v938_v19  ;;  %v910_v19 = vld [vmem:[#allocation7 + $0x38] sm:$0xff] }
 0x649   :  { %729 = vmatpush.bf16.msrb.mxu2 %v910_v19 }
 0x64a   :  { %v582_v23 = vsel %vm312_vm8, %v509_v22, %v940_v20  ;;  %v446_v24 = vsel %vm312_vm8, %v373_v51, %v939_v21  ;;  %v909_v20 = vld [vmem:[#allocation7 + $0x30] sm:$0xff]  ;;  %v946_v22 = vld [vmem:[#allocation8 + $0xc] ss:$0 sm:$0xff]  ;;  %vm824_vm8 = vcmask 523264  }
 0x64b   :  { %v583_v25 = vpack.c.bf16 %v582_v23, %v446_v24 }
 0x64d   :  { %875 = vmatmul.msk.bf16.vlgmr.msra.gmra.mxu3 %vm291_vm7, %v583_v25  ;;  %730 = vmatpush.bf16.msrb.mxu2 %v909_v20 }
 0x6d0   :  { %v609_v27 = vpop.f32.mrf.mxu3 }
 0x6d1   :  { %v610_v28 = vadd.f32 %v943_v26, %v609_v27 }
 0x6d3   :  { %v614_v29 = vadd.f32 %v610_v28, %v1177_v10 }
 0x6d5   :  { %v616_v30 = vsel %vm291_vm7, %v614_v29, 0.0 }
 0x6d6   :  { %617 = vadd.xlane.f32.xlu1 %v616_v30 }
 0x6d8   :  { %v611_v31 = vpop.f32.mrf.mxu3 }
 0x6d9   :  { %v612_v32 = vadd.f32 %v943_v26, %v611_v31 }
 0x6db   :  { %v615_v33 = vadd.f32 %v612_v32, %v1182_v14 }
 0x6dd   :  { %v619_v34 = vsel %vm291_vm7, %v615_v33, 0.0 }
 0x6de   :  { %620 = vadd.xlane.f32.xlu2 %v619_v34 }
 0x749   :  { %v618_v10 = vpop.xlane.xlu1 %617 }
 0x74a   :  { %v629_v42 = vmul.f32 %v1225_v41, %v618_v10 }
 0x74c   :  { %v631_v43 = vsub.f32 %v614_v29, %v629_v42  ;;  %v947_v29 = vld [vmem:[#allocation8 + $0xd] ss:$0 sm:$0xff] }
 0x74e   :  { %v633_v44 = vmul.f32 %v631_v43, %v631_v43 }
 0x750   :  { %v635_v14 = vsel %vm291_vm7, %v633_v44, 0.0 }
 0x751   :  { %v621_v45 = vpop.xlane.xlu2 %620  ;;  %636 = vadd.xlane.f32.xlu0 %v635_v14 }
 0x752   :  { %v630_v46 = vmul.f32 %v1225_v41, %v621_v45 }
 0x754   :  { %v632_v47 = vsub.f32 %v615_v33, %v630_v46 }
 0x756   :  { %v634_v48 = vmul.f32 %v632_v47, %v632_v47 }
 0x758   :  { %v638_v49 = vsel %vm291_vm7, %v634_v48, 0.0  ;;  %v912_v48 = vld [vmem:[#allocation7 + $0x48] sm:$0xff] }
 0x759   :  { %639 = vadd.xlane.f32.xlu1 %v638_v49  ;;  %812 = vmatpush.bf16.msrb.mxu1 %v912_v48 }
 0x7c4   :  { %v637_v51 = vpop.xlane.xlu0 %636 }
 0x7c5   :  { %v641_v52 = vmul.f32 %v637_v51, %v1225_v41  ;;  %v911_v51 = vld [vmem:[#allocation7 + $0x40] sm:$0xff] }
 0x7c6   :  { %813 = vmatpush.bf16.msrb.mxu1 %v911_v51 }
 0x7c7   :  { %v643_v54 = vadd.f32 1e-05, %v641_v52 }
 0x7c9   :  { %969 = vrsqrt.f32 %v643_v54  ;;  %vm651_vm12 = vweird.f32 %v643_v54 }
 0x7cc   :  { %v640_v55 = vpop.xlane.xlu1 %639 }
 0x7cd   :  { %v642_v56 = vmul.f32 %v640_v55, %v1225_v41 }
 0x7cf   :  { %v970_v57 = vpop.eup %969  ;;  %v644_v58 = vadd.f32 1e-05, %v642_v56 }
 0x7d0   :  { %v646_v59 = vmul.f32 %v970_v57, %v643_v54  ;;  %vm652_vm11 = vweird.f32 %v970_v57 }
 0x7d1   :  { %971 = vrsqrt.f32 %v644_v58  ;;  %vm653_vm13 = vmor %vm651_vm12, %vm652_vm11  ;;  %vm661_vm15 = vweird.f32 %v644_v58 }
 0x7d2   :  { %v647_v60 = vmul.f32 %v970_v57, %v646_v59 }
 0x7d4   :  { %v648_v61 = vmul.f32 0.5, %v647_v60 }
 0x7d6   :  { %v649_v62 = vsub.f32 1.5, %v648_v61 }
 0x7d7   :  { %v972_v63 = vpop.eup %971 }
 0x7d8   :  { %v650_v0 = vmul.f32 %v970_v57, %v649_v62  ;;  %v656_v1 = vmul.f32 %v972_v63, %v644_v58  ;;  %vm662_vm14 = vweird.f32 %v972_v63 }
 0x7d9   :  { %vm663_vm0 = vmor %vm661_vm15, %vm662_vm14 }
 0x7da   :  { %v657_v2 = vmul.f32 %v972_v63, %v656_v1  ;;  %v654_v3 = vsel %vm653_vm13, %v970_v57, %v650_v0 }
 0x7db   :  { %v665_v6 = vmul.f32 %v654_v3, %v631_v43  ;;  %v948_v3 = vld [vmem:[#allocation8 + $0xe] ss:$0 sm:$0xff] }
 0x7dc   :  { %v658_v4 = vmul.f32 0.5, %v657_v2 }
 0x7dd   :  { %v668_v12 = vmul.f32 %v944_v7, %v665_v6  ;;  %v949_v6 = vld [vmem:[#allocation8 + $0xf] ss:$0 sm:$0xff] }
 0x7de   :  { %v659_v5 = vsub.f32 1.5, %v658_v4 }
 0x7df   :  { %v671_v16 = vadd.f32 %v945_v13, %v668_v12 }
 0x7e0   :  { %v660_v8 = vmul.f32 %v972_v63, %v659_v5 }
 0x7e2   :  { %v664_v9 = vsel %vm663_vm0, %v972_v63, %v660_v8 }
 0x7e3   :  { %v666_v11 = vmul.f32 %v664_v9, %v632_v47 }
 0x7e5   :  { %v669_v15 = vmul.f32 %v944_v7, %v666_v11 }
 0x7e7   :  { %v672_v17 = vadd.f32 %v945_v13, %v669_v15  ;;  %v950_v15 = vld [vmem:[#allocation8 + $0x10] ss:$0 sm:$0xff] }
 0x7e9   :  { %v673_v18 = vpack.c.bf16 %v672_v17, %v671_v16 }
 0x7eb   :  { %884 = vmatmul.msk.bf16.vlgmr.msrb.gmra.mxu0 %vm291_vm7, %v673_v18 }
 0x868   :  { %v699_v21 = vpop.f32.mrf.mxu0 }
 0x869   :  { %v700_v23 = vadd.f32 %v946_v22, %v699_v21 }
 0x86b   :  { %v704_v26 = vmax.f32 %v700_v23, 0.0 }
 0x870   :  { %v701_v24 = vpop.f32.mrf.mxu0 }
 0x871   :  { %v702_v25 = vadd.f32 %v946_v22, %v701_v24 }
 0x873   :  { %v705_v27 = vmax.f32 %v702_v25, 0.0 }
 0x875   :  { %v706_v28 = vpack.c.bf16 %v705_v27, %v704_v26 }
 0x877   :  { %893 = vmatmul.msk.bf16.vlgmr.msrb.gmra.mxu2 %vm291_vm7, %v706_v28 }
 0x8fa   :  { %v732_v30 = vpop.f32.mrf.mxu2 }
 0x8fb   :  { %v733_v31 = vadd.f32 %v947_v29, %v732_v30 }
 0x8fd   :  { %v737_v32 = vadd.f32 %v733_v31, %v671_v16 }
 0x8ff   :  { %v739_v33 = vsel %vm291_vm7, %v737_v32, 0.0 }
 0x900   :  { %740 = vadd.xlane.f32.xlu1 %v739_v33 }
 0x902   :  { %v734_v34 = vpop.f32.mrf.mxu2 }
 0x903   :  { %v735_v35 = vadd.f32 %v947_v29, %v734_v34 }
 0x905   :  { %v738_v36 = vadd.f32 %v735_v35, %v672_v17 }
 0x907   :  { %v742_v37 = vsel %vm291_vm7, %v738_v36, 0.0 }
 0x908   :  { %743 = vadd.xlane.f32.xlu2 %v742_v37 }
 0x973   :  { %v741_v38 = vpop.xlane.xlu1 %740 }
 0x974   :  { %v745_v39 = vmul.f32 %v741_v38, %v1225_v41 }
 0x976   :  { %v747_v40 = vsub.f32 %v737_v32, %v745_v39 }
 0x978   :  { %v749_v10 = vmul.f32 %v747_v40, %v747_v40 }
 0x97a   :  { %v751_v42 = vsel %vm291_vm7, %v749_v10, 0.0 }
 0x97b   :  { %v744_v43 = vpop.xlane.xlu2 %743  ;;  %752 = vadd.xlane.f32.xlu0 %v751_v42 }
 0x97c   :  { %v746_v44 = vmul.f32 %v744_v43, %v1225_v41 }
 0x97e   :  { %v748_v14 = vsub.f32 %v738_v36, %v746_v44 }
 0x980   :  { %v750_v45 = vmul.f32 %v748_v14, %v748_v14 }
 0x982   :  { %v754_v46 = vsel %vm291_vm7, %v750_v45, 0.0 }
 0x983   :  { %755 = vadd.xlane.f32.xlu1 %v754_v46 }
 0x9ee   :  { %v753_v47 = vpop.xlane.xlu0 %752 }
 0x9ef   :  { %v757_v49 = vmul.f32 %v753_v47, %v1225_v41 }
 0x9f1   :  { %v759_v50 = vadd.f32 1e-05, %v757_v49 }
 0x9f3   :  { %973 = vrsqrt.f32 %v759_v50  ;;  %vm767_vm2 = vweird.f32 %v759_v50 }
 0x9f6   :  { %v756_v52 = vpop.xlane.xlu1 %755 }
 0x9f7   :  { %v758_v53 = vmul.f32 %v756_v52, %v1225_v41 }
 0x9f9   :  { %v974_v54 = vpop.eup %973  ;;  %v760_v55 = vadd.f32 1e-05, %v758_v53 }
 0x9fa   :  { %v762_v56 = vmul.f32 %v974_v54, %v759_v50  ;;  %vm768_vm1 = vweird.f32 %v974_v54 }
 0x9fb   :  { %975 = vrsqrt.f32 %v760_v55  ;;  %vm769_vm3 = vmor %vm767_vm2, %vm768_vm1  ;;  %vm777_vm5 = vweird.f32 %v760_v55 }
 0x9fc   :  { %v763_v57 = vmul.f32 %v974_v54, %v762_v56 }
 0x9fe   :  { %v764_v58 = vmul.f32 0.5, %v763_v57 }
 0xa00   :  { %v765_v59 = vsub.f32 1.5, %v764_v58 }
 0xa01   :  { %v976_v60 = vpop.eup %975 }
 0xa02   :  { %v766_v61 = vmul.f32 %v974_v54, %v765_v59  ;;  %v772_v62 = vmul.f32 %v976_v60, %v760_v55  ;;  %vm778_vm4 = vweird.f32 %v976_v60 }
 0xa03   :  { %vm779_vm6 = vmor %vm777_vm5, %vm778_vm4 }
 0xa04   :  { %v773_v63 = vmul.f32 %v976_v60, %v772_v62  ;;  %v770_v0 = vsel %vm769_vm3, %v974_v54, %v766_v61 }
 0xa05   :  { %v781_v41 = vmul.f32 %v770_v0, %v747_v40 }
 0xa06   :  { %v774_v1 = vmul.f32 0.5, %v773_v63 }
 0xa07   :  { %v784_v7 = vmul.f32 %v948_v3, %v781_v41 }
 0xa08   :  { %v775_v2 = vsub.f32 1.5, %v774_v1 }
 0xa09   :  { %v787_v11 = vadd.f32 %v949_v6, %v784_v7 }
 0xa0a   :  { %v776_v4 = vmul.f32 %v976_v60, %v775_v2 }
 0xa0c   :  { %v780_v5 = vsel %vm779_vm6, %v976_v60, %v776_v4 }
 0xa0d   :  { %v782_v8 = vmul.f32 %v780_v5, %v748_v14 }
 0xa0f   :  { %v785_v9 = vmul.f32 %v948_v3, %v782_v8 }
 0xa11   :  { %v788_v12 = vadd.f32 %v949_v6, %v785_v9 }
 0xa13   :  { %v789_v13 = vpack.c.bf16 %v788_v12, %v787_v11 }
 0xa15   :  { %902 = vmatmul.msk.bf16.vlgmr.msrb.gmra.mxu1 %vm291_vm7, %v789_v13 }
 0xa92   :  { %v815_v16 = vpop.f32.mrf.mxu1 }
 0xa93   :  { %v816_v17 = vadd.f32 %v950_v15, %v815_v16 }
 0xa9a   :  { %v817_v18 = vpop.f32.mrf.mxu1 }
 0xa9b   :  { %v818_v19 = vadd.f32 %v950_v15, %v817_v18 }
 0xa9d   :  { %821 = vrot.lane.b32.xlu2 %v818_v19, %s1112_s9 }
 0xaf7   :  { %v822_v20 = vpop.permute.xlu2 %821 }
 0xaf8   :  { %v825_v21 = vsel %vm824_vm8, %v816_v17, %v822_v20 }
 0xaf9   :  { %826 = vst [vmem:[#allocation10] sm:$0xff] %v825_v21 }
 0xafa   :  { %837 = dma.vmem_to_hbm [thread:$0]  %s833_s18, 128, %s835_s21, [#allocation4]  }
 0xafb   :  { %1103 = dma.done.wait [#allocation4], 128  }
 0xafc   :  { %1104 = vsyncadd [#allocation4], 4294967168 }
 0xafd   :  { %842 = vsyncpa [#allocation3], 1 }
 0xafe   :  { %843 = vsyncpa [#allocation6], 1 }
 0xaff   :  { %844 = vsyncpa [#allocation9], 1 }
 0xb00   :  { %845 = vsyncpa [#allocation4], 1 }

</bundles_post_ra>
